<compile_context>
chip_gen: v7x
topology: tpu7x:2x2x1
jax: 0.10.0
libtpu: 0.0.40
codegen_flags: <defaults>
</compile_context>

<pallas_src>
import functools

import numpy as np
import jax
import jax.numpy as jnp
from jax.experimental import pallas as pl
from jax.experimental.pallas import tpu as pltpu

EPS_AGG = 1e-7   # epsilon in the torch aggregation denominator
EPS_IN = 1e-5    # nn.InstanceNorm1d default eps


def _round_up(x, m):
    return ((x + m - 1) // m) * m


def node_features_kernel(x_ref, m_ref, w1_ref, w2_ref, out_ref, *, n_feat, f_pad):
    """One graph per grid step.

    x_ref  : [N, Fp]   node features; cols [0,F) real, col Fp-1 is a constant 1
                       (bias channel), everything else 0.            (compute dtype)
    m_ref  : [N, N]    row-normalized sigmoid-weighted adjacency.     (compute dtype)
    w1_ref : [Fp, H2]  fused first layers of FCNN_one|FCNN_two with folded biases
                       and a passthrough column keeping the bias channel alive.
    w2_ref : [H2, 2Fp] block-diagonal fused second layers with folded biases:
                       cols [0,Fp) -> FCNN_one output, cols [Fp,2Fp) -> FCNN_two.
    out_ref: [N, Fp]   float32 output (padded cols are garbage; sliced off outside).
    """
    x = x_ref[...]

    # Both FCNN first layers in one MXU matmul (biases folded via the 1-lane of x).
    h = jnp.maximum(
        jnp.dot(x, w1_ref[...], preferred_element_type=jnp.float32), 0.0)

    # Both FCNN second layers in one block-diagonal MXU matmul.
    hh = jnp.dot(h.astype(w2_ref.dtype), w2_ref[...],
                 preferred_element_type=jnp.float32)
    h1 = hh[:, :f_pad]       # FCNN_one(x_i)          [N, Fp]  (pad cols exactly 0)
    h2 = hh[:, f_pad:]       # FCNN_two(x_n) per node [N, Fp]  (pad cols exactly 0)

    # Neighbor aggregation: M_hat already holds sigmoid(e)/denominator weights.
    agg = jnp.dot(m_ref[...], h2.astype(m_ref.dtype),
                  preferred_element_type=jnp.float32)
    inter = h1 + agg

    # InstanceNorm1d over the F real features (pad columns are exactly zero, so
    # full-lane sums divided by F give the biased statistics).  Stats kept in f32.
    inv_f = 1.0 / n_feat
    mu = jnp.sum(inter, axis=-1, keepdims=True) * inv_f
    var = jnp.maximum(
        jnp.sum(inter * inter, axis=-1, keepdims=True) * inv_f - mu * mu, 0.0)
    normed = (inter - mu) * jax.lax.rsqrt(var + EPS_IN)

    # TODO(synk): nn.Dropout(p=0.1) is constructed in training mode in the torch
    # code; eval-mode (identity) semantics are used to keep the kernel deterministic.
    out_ref[...] = x.astype(jnp.float32) + jnp.maximum(normed, 0.0)


def _normalized_adjacency(src, dst, e, n_nodes):
    """O(E) scatter-add: M_hat[i, n] = sum_j sigmoid(e_j) * incidence / denom_i."""
    s = jax.nn.sigmoid(e.astype(jnp.float32))
    m = jnp.zeros((n_nodes, n_nodes), jnp.float32)
    m = m.at[src, dst].add(s)
    m = m.at[dst, src].add(s)
    denom = EPS_AGG + jnp.sum(m, axis=1, keepdims=True)   # eps / denominator in f32
    return m / denom


def node_features_forward(node_features, edge_index, edge_features, params,
                          compute_dtype=jnp.bfloat16):
    """Batched NodeFeatures forward.

    node_features: [G, N, F] float; edge_index: [G, 2, E] int; edge_features: [G, E].
    params: (w1a, b1a, w2a, b2a, w1b, b1b, w2b, b2b) with weights pre-transposed
            to [in, out] and biases shaped [1, out].
    """
    w1a, b1a, w2a, b2a, w1b, b1b, w2b, b2b = params
    G, N, F = node_features.shape
    H = w1a.shape[1]

    f_pad = max(128, _round_up(F + 1, 128))      # lane-dense feature dim (+1 bias lane)
    h_pad = max(128, _round_up(2 * H + 1, 128))  # lane-dense hidden dim  (+1 bias lane)

    # Fused first layer (with folded biases + passthrough for the bias channel).
    w1aug = jnp.zeros((f_pad, h_pad), jnp.float32)
    w1aug = w1aug.at[:F, :H].set(w1a)
    w1aug = w1aug.at[:F, H:2 * H].set(w1b)
    w1aug = w1aug.at[f_pad - 1, :H].set(b1a[0])
    w1aug = w1aug.at[f_pad - 1, H:2 * H].set(b1b[0])
    w1aug = w1aug.at[f_pad - 1, 2 * H].set(1.0)   # bias channel stays 1 after ReLU

    # Block-diagonal fused second layer (with folded biases).
    w2aug = jnp.zeros((h_pad, 2 * f_pad), jnp.float32)
    w2aug = w2aug.at[:H, :F].set(w2a)
    w2aug = w2aug.at[H:2 * H, f_pad:f_pad + F].set(w2b)
    w2aug = w2aug.at[2 * H, :F].set(b2a[0])
    w2aug = w2aug.at[2 * H, f_pad:f_pad + F].set(b2b[0])

    # Lane-dense node features with a constant-1 bias channel in the last lane.
    x_pad = jnp.zeros((G, N, f_pad), jnp.float32)
    x_pad = x_pad.at[:, :, :F].set(node_features.astype(jnp.float32))
    x_pad = x_pad.at[:, :, f_pad - 1].set(1.0)

    # O(E) wrapper-side aggregation matrix (replaces the [E, N] one-hot matmuls).
    m_hat = jax.vmap(lambda s, d, e: _normalized_adjacency(s, d, e, N))(
        edge_index[:, 0, :], edge_index[:, 1, :], edge_features)

    x_pad = x_pad.astype(compute_dtype)
    m_hat = m_hat.astype(compute_dtype)
    w1aug = w1aug.astype(compute_dtype)
    w2aug = w2aug.astype(compute_dtype)

    kernel = functools.partial(node_features_kernel, n_feat=F, f_pad=f_pad)
    out = pl.pallas_call(
        kernel,
        out_shape=jax.ShapeDtypeStruct((G, N, f_pad), jnp.float32),
        grid=(G,),
        in_specs=[
            pl.BlockSpec((None, N, f_pad), lambda g: (g, 0, 0)),   # x       (per graph)
            pl.BlockSpec((None, N, N), lambda g: (g, 0, 0)),       # M_hat   (per graph)
            pl.BlockSpec((f_pad, h_pad), lambda g: (0, 0)),        # fused W1 (resident)
            pl.BlockSpec((h_pad, 2 * f_pad), lambda g: (0, 0)),    # fused W2 (resident)
        ],
        out_specs=pl.BlockSpec((None, N, f_pad), lambda g: (g, 0, 0)),
        compiler_params=pltpu.CompilerParams(
            dimension_semantics=("parallel",)),   # graphs independent -> both v7x TCs
    )(x_pad, m_hat, w1aug, w2aug)
    return out[:, :, :F]


def init_fcnn(key, c_in, c_hidden, c_out):
    """Deterministic init mimicking nn.Linear (uniform +/- 1/sqrt(fan_in)), W pre-transposed."""
    k1, k2, k3, k4 = jax.random.split(key, 4)
    lim1 = 1.0 / np.sqrt(c_in)
    lim2 = 1.0 / np.sqrt(c_hidden)
    w1 = jax.random.uniform(k1, (c_in, c_hidden), jnp.float32, -lim1, lim1)
    b1 = jax.random.uniform(k2, (1, c_hidden), jnp.float32, -lim1, lim1)
    w2 = jax.random.uniform(k3, (c_hidden, c_out), jnp.float32, -lim2, lim2)
    b2 = jax.random.uniform(k4, (1, c_out), jnp.float32, -lim2, lim2)
    return w1, b1, w2, b2


def reference_numpy(x, src, dst, e, params):
    """Straight transcription of the per-node torch loops (eval-mode dropout)."""
    w1a, b1a, w2a, b2a, w1b, b1b, w2b, b2b = [np.asarray(p, np.float32) for p in params]
    x = np.asarray(x, np.float32)
    src = np.asarray(src); dst = np.asarray(dst); e = np.asarray(e, np.float32)

    def fcnn(v, w1, b1, w2, b2):
        h = np.maximum(v @ w1 + b1[0], 0.0)
        return h @ w2 + b2[0]

    sig = lambda z: 1.0 / (1.0 + np.exp(-z))
    N, _ = x.shape
    out = x.copy()
    for i in range(N):
        inter = fcnn(x[i], w1a, b1a, w2a, b2a)
        terms = []
        denom = EPS_AGG
        for j in range(src.shape[0]):
            if src[j] == i:
                terms.append((sig(e[j]), int(dst[j])))
            if dst[j] == i:
                terms.append((sig(e[j]), int(src[j])))
        for s_, _ in terms:
            denom += s_
        for s_, n in terms:
            inter = inter + (s_ / denom) * fcnn(x[n], w1b, b1b, w2b, b2b)
        mu = inter.mean()
        var = ((inter - mu) ** 2).mean()
        normed = (inter - mu) / np.sqrt(var + EPS_IN)
        out[i] = x[i] + np.maximum(normed, 0.0)
    return out


if __name__ == "__main__":
    key = jax.random.PRNGKey(0)
    c_in1, c_out1, c_out2 = 16, 32, 16     # c_out2 must equal c_in1 (residual add)
    G, N, E = 4, 8, 12                     # batch of G graphs per pallas_call

    k_x, k_e, k_idx, k_p1, k_p2 = jax.random.split(key, 5)
    node_features = jax.random.normal(k_x, (G, N, c_in1), jnp.float32)
    edge_features = jax.random.normal(k_e, (G, E), jnp.float32)
    edge_index = jax.random.randint(k_idx, (G, 2, E), 0, N, jnp.int32)

    params = init_fcnn(k_p1, c_in1, c_out1, c_out2) + init_fcnn(k_p2, c_in1, c_out1, c_out2)

    # Per-graph reference (transcription of the torch per-node loops).
    ref = np.stack([
        reference_numpy(np.asarray(node_features[g]),
                        np.asarray(edge_index[g, 0]),
                        np.asarray(edge_index[g, 1]),
                        np.asarray(edge_features[g]),
                        params)
        for g in range(G)])

    # Check the exact-math path (f32) tightly and the fast MXU path (bf16 operands,
    # f32 accumulation / f32 norm statistics) at bf16-appropriate tolerance.
    for dtype, rtol, atol in ((jnp.float32, 1e-3, 1e-3),
                              (jnp.bfloat16, 1e-1, 1e-1)):
        out = node_features_forward(node_features, edge_index, edge_features,
                                    params, compute_dtype=dtype)
        out = jax.block_until_ready(out)
        np.testing.assert_allclose(np.asarray(out), ref, rtol=rtol, atol=atol)

    print("KERNEL_OK")
</pallas_src>

<mosaic_0001>
module attributes {stable_mosaic.version = 11 : i64} {
  func.func @node_features_kernel(%arg0: i32, %arg1: memref<1x8x128xf32, #tpu.memory_space<vmem>>, %arg2: memref<1x8x8xf32, #tpu.memory_space<vmem>>, %arg3: memref<128x128xf32, #tpu.memory_space<vmem>>, %arg4: memref<128x256xf32, #tpu.memory_space<vmem>>, %arg5: memref<1x8x128xf32, #tpu.memory_space<vmem>>) attributes {dimension_semantics = [#tpu.dimension_semantics<parallel>], iteration_bounds = array<i64: 4>, scalar_prefetch = 0 : i64, scratch_operands = 0 : i64, tpu.core_type = #tpu.core_type<tc>, window_params = [{transform_indices = @transform_0, window_bounds = array<i64: 1, 8, 128>}, {transform_indices = @transform_1, window_bounds = array<i64: 1, 8, 8>}, {pipeline_mode = #tpu.pipeline_mode<synchronous>, transform_indices = @transform_2, window_bounds = array<i64: 128, 128>}, {pipeline_mode = #tpu.pipeline_mode<synchronous>, transform_indices = @transform_3, window_bounds = array<i64: 128, 256>}, {transform_indices = @transform_4, window_bounds = array<i64: 1, 8, 128>}]} {
    %c0 = arith.constant 0 : index
    %c0_0 = arith.constant 0 : index
    %c0_1 = arith.constant 0 : index
    %0 = vector.load %arg1[%c0, %c0_0, %c0_1] : memref<1x8x128xf32, #tpu.memory_space<vmem>>, vector<1x8x128xf32>
    %1 = vector.shape_cast %0 : vector<1x8x128xf32> to vector<8x128xf32>
    %c0_2 = arith.constant 0 : index
    %c0_3 = arith.constant 0 : index
    %2 = vector.load %arg3[%c0_2, %c0_3] : memref<128x128xf32, #tpu.memory_space<vmem>>, vector<128x128xf32>
    %cst = arith.constant dense<0.000000e+00> : vector<8x128xf32>
    %3 = tpu.matmul %1, %2, %cst {dimension_numbers = #tpu.dot_dimension_numbers<[1], [0], [0], [1], [0, 0, 1, 1], [], []>} : vector<8x128xf32>, vector<128x128xf32>, vector<8x128xf32> -> vector<8x128xf32>
    %cst_4 = arith.constant 0.000000e+00 : f32
    %4 = vector.broadcast %cst_4 : f32 to vector<8x128xf32>
    %5 = arith.maximumf %3, %4 : vector<8x128xf32>
    %c0_5 = arith.constant 0 : index
    %c0_6 = arith.constant 0 : index
    %6 = vector.load %arg4[%c0_5, %c0_6] : memref<128x256xf32, #tpu.memory_space<vmem>>, vector<128x256xf32>
    %cst_7 = arith.constant dense<0.000000e+00> : vector<8x256xf32>
    %7 = tpu.matmul %5, %6, %cst_7 {dimension_numbers = #tpu.dot_dimension_numbers<[1], [0], [0], [1], [0, 0, 1, 1], [], []>} : vector<8x128xf32>, vector<128x256xf32>, vector<8x256xf32> -> vector<8x256xf32>
    %8 = vector.extract_strided_slice %7 {offsets = [0, 0], sizes = [8, 128], strides = [1, 1]} : vector<8x256xf32> to vector<8x128xf32>
    %9 = vector.extract_strided_slice %7 {offsets = [0, 128], sizes = [8, 128], strides = [1, 1]} : vector<8x256xf32> to vector<8x128xf32>
    %c0_8 = arith.constant 0 : index
    %c0_9 = arith.constant 0 : index
    %c0_10 = arith.constant 0 : index
    %10 = vector.load %arg2[%c0_8, %c0_9, %c0_10] : memref<1x8x8xf32, #tpu.memory_space<vmem>>, vector<1x8x8xf32>
    %11 = vector.shape_cast %10 : vector<1x8x8xf32> to vector<8x8xf32>
    %cst_11 = arith.constant dense<0.000000e+00> : vector<8x128xf32>
    %12 = tpu.matmul %11, %9, %cst_11 {dimension_numbers = #tpu.dot_dimension_numbers<[1], [0], [0], [1], [0, 0, 1, 1], [], []>} : vector<8x8xf32>, vector<8x128xf32>, vector<8x128xf32> -> vector<8x128xf32>
    %13 = arith.addf %8, %12 : vector<8x128xf32>
    %cst_12 = arith.constant dense<0.000000e+00> : vector<8xf32>
    %14 = vector.multi_reduction <add>, %13, %cst_12 [1] : vector<8x128xf32> to vector<8xf32>
    %15 = vector.shape_cast %14 : vector<8xf32> to vector<8x1xf32>
    %cst_13 = arith.constant 6.250000e-02 : f32
    %16 = vector.broadcast %cst_13 : f32 to vector<8x1xf32>
    %17 = arith.mulf %15, %16 : vector<8x1xf32>
    %18 = arith.mulf %13, %13 : vector<8x128xf32>
    %cst_14 = arith.constant dense<0.000000e+00> : vector<8xf32>
    %19 = vector.multi_reduction <add>, %18, %cst_14 [1] : vector<8x128xf32> to vector<8xf32>
    %20 = vector.shape_cast %19 : vector<8xf32> to vector<8x1xf32>
    %cst_15 = arith.constant 6.250000e-02 : f32
    %21 = vector.broadcast %cst_15 : f32 to vector<8x1xf32>
    %22 = arith.mulf %20, %21 : vector<8x1xf32>
    %23 = arith.mulf %17, %17 : vector<8x1xf32>
    %24 = arith.subf %22, %23 : vector<8x1xf32>
    %cst_16 = arith.constant 0.000000e+00 : f32
    %25 = vector.broadcast %cst_16 : f32 to vector<8x1xf32>
    %26 = arith.maximumf %24, %25 : vector<8x1xf32>
    %27 = vector.broadcast %17 : vector<8x1xf32> to vector<8x128xf32>
    %28 = arith.subf %13, %27 : vector<8x128xf32>
    %cst_17 = arith.constant 9.99999974E-6 : f32
    %29 = vector.broadcast %cst_17 : f32 to vector<8x1xf32>
    %30 = arith.addf %26, %29 : vector<8x1xf32>
    %31 = math.rsqrt %30 : vector<8x1xf32>
    %32 = vector.broadcast %31 : vector<8x1xf32> to vector<8x128xf32>
    %33 = arith.mulf %28, %32 : vector<8x128xf32>
    %cst_18 = arith.constant 0.000000e+00 : f32
    %34 = vector.broadcast %cst_18 : f32 to vector<8x128xf32>
    %35 = arith.maximumf %33, %34 : vector<8x128xf32>
    %36 = arith.addf %1, %35 : vector<8x128xf32>
    %c0_19 = arith.constant 0 : index
    %c0_20 = arith.constant 0 : index
    %c0_21 = arith.constant 0 : index
    %37 = vector.load %arg5[%c0_19, %c0_20, %c0_21] : memref<1x8x128xf32, #tpu.memory_space<vmem>>, vector<1x8x128xf32>
    %38 = vector.shape_cast %37 : vector<1x8x128xf32> to vector<8x128xf32>
    %39 = vector.shape_cast %36 : vector<8x128xf32> to vector<1x8x128xf32>
    tpu.vector_store %arg5[%c0_19, %c0_20, %c0_21], %39 {strides = array<i32>} : memref<1x8x128xf32, #tpu.memory_space<vmem>>, vector<1x8x128xf32>,
    return
  }
  func.func @transform_0(%arg0: i32) -> (i32, i32, i32) {
    %c0_i32 = arith.constant 0 : i32
    %c0_i32_0 = arith.constant 0 : i32
    %c0_i32_1 = arith.constant 0 : i32
    return %arg0, %c0_i32, %c0_i32_0 : i32, i32, i32
  }
  func.func @transform_1(%arg0: i32) -> (i32, i32, i32) {
    %c0_i32 = arith.constant 0 : i32
    %c0_i32_0 = arith.constant 0 : i32
    %c0_i32_1 = arith.constant 0 : i32
    return %arg0, %c0_i32, %c0_i32_0 : i32, i32, i32
  }
  func.func @transform_2(%arg0: i32) -> (i32, i32) {
    %c0_i32 = arith.constant 0 : i32
    %c0_i32_0 = arith.constant 0 : i32
    %c0_i32_1 = arith.constant 0 : i32
    return %c0_i32, %c0_i32_0 : i32, i32
  }
  func.func @transform_3(%arg0: i32) -> (i32, i32) {
    %c0_i32 = arith.constant 0 : i32
    %c0_i32_0 = arith.constant 0 : i32
    %c0_i32_1 = arith.constant 0 : i32
    return %c0_i32, %c0_i32_0 : i32, i32
  }
  func.func @transform_4(%arg0: i32) -> (i32, i32, i32) {
    %c0_i32 = arith.constant 0 : i32
    %c0_i32_0 = arith.constant 0 : i32
    %c0_i32_1 = arith.constant 0 : i32
    return %arg0, %c0_i32, %c0_i32_0 : i32, i32, i32
  }
}

</mosaic_0001>

<bundles_post_ra>
// kernel: tpu_custom_call.1
= control target key start
LH: loop header
LB: loop body
LE: loop exit
PB: predicated region body
PF: predicated region fallthrough
CT: control target
= control target key end

     0   :  { %s1421_s0 = inlined_call_operand.hbm [shape: f32[4,8,128], index: 0, kind: input, shape index: {}]   ;;  %s1422_s1 = inlined_call_operand.hbm [shape: f32[4,8,8], index: 1, kind: input, shape index: {}]   ;;  %s1423_s2 = inlined_call_operand.hbm [shape: f32[128,128], index: 2, kind: input, shape index: {}]   ;;  %s1424_s3 = inlined_call_operand.hbm [shape: f32[128,256], index: 3, kind: input, shape index: {}]   ;;  %s1425_s4 = inlined_call_operand.hbm [shape: f32[4,8,128], index: 4, kind: output, shape index: {}]  }
   0x1   :  { %1430 = sst [smem:[#allocation16_spill]] %s1423_s2 }
   0x2   :  { %9 = vsyncpa [#allocation3], 0 }
   0x3   :  { %11 = vsyncpa [#allocation3 + $0x1], 0 }
   0x4   :  { %12 = vsyncpa [#allocation6], 0 }
   0x5   :  { %14 = vsyncpa [#allocation6 + $0x1], 0 }
   0x6   :  { %15 = vsyncpa [#allocation9], 0 }
   0x7   :  { %16 = vsyncpa [#allocation4], 0 }
   0x8   :  { %18 = vsyncpa [#allocation4 + $0x1], 0  ;;  %s1138_s15 = smov 0   ;;  %s1140_s16 = smov 0  }
   0x9   :  { %s1142_s17 = smov 0   ;;  %s1144_s18 = smov 0  }
   0xa LB: > { %s1159_s19 = sadd.s32 4294967295, %s1099_s18   ;;  %s689_s20 = sadd.s32 4294967294, %s1099_s18   ;;  %s1099_s18 = sphi %s1144_s18, %s1450_s18   ;;  %s1095_s17 = sphi %s1142_s17, %s1449_s17   ;;  %s1091_s16 = sphi %s1140_s16, %s1448_s16   ;;  %s1087_s15 = sphi %s1138_s15, %s1447_s15  }
   0xb   : > { %p44_p0 = scmp.ne.s32.totalorder %s1091_s16, %s1087_s15  ;;  %p1426_p1 = scmp.eq.s32.totalorder %s1159_s19, 0 }
   0xc   : > { %p142_p3 = scmp.eq.s32.totalorder %s689_s20, 3  ;;  %p690_p5 = scmp.ge.s32.totalorder %s1099_s18, 1 }
   0xd   : > { %p1168_p4 = por %p1426_p1, %p44_p0  ;;  %p149_p7 = scmp.lt.s32.totalorder %s1099_s18, 5 }
   0xe   : > { %p1173_p6 = por %p142_p3, %p44_p0  ;;  %s1101_s24 = smov [#allocation7]  }
   0xf   : > { %s1431_s21 = scalar_select %p1168_p4, 1, 0 }
  0x10   : > { %s1432_s22 = scalar_select %p1173_p6, 1, 0 }
  0x11   : > { %p1178_p8 = pnand %p690_p5, %p149_p7  ;;  %s161_s25 = sshll.u32 %s1101_s24, 4  ;;  %s162_s25 = int_to_ptr.vmem [resolvable:$true] %s161_s25 }
  0x12   : > { %s1102_s27 = smov [#allocation8]   ;;  %s1435_s2 = sld [smem:[#allocation16_spill]] }
  0x13   : > { %s1433_s23 = scalar_select %p1178_p8, 1, 0 }
  0x14   : > { %p838_p9 = pneg %p1178_p8  ;;  %s174_s28 = sshll.u32 %s1102_s27, 4  ;;  %s1190_s28 = int_to_ptr.vmem [resolvable:$true] %s174_s28 }
  0x16   : > { %p1186_p10 = pnand %p838_p9, %p1426_p1 }
  0x18   : > { %s905_s5 = scalar_lea.hbm %s1435_s2, 2048  ;;  %p907_p12 = pneg %p1186_p10 }
  0x19   : > { %p906_p11 = scmp.ne.s32.totalorder %s1435_s2, %s905_s5  ;;  %p912_p3 = scmp.lt.u32.totalorder %s905_s5, %s1435_s2 }
  0x1b   : > { %p908_p13 = pnand %p907_p12, %p906_p11 }
  0x1d   : > { %p909_p0 = pneg %p908_p13 }
  0x1f   : > { %p914_p5 = pnand %p912_p3, %p909_p0 }
  0x21   : > { %917 = shalt.err (!%p914_p5)
}
  0x22   : > { %s918_s10 = scalar_lea.vmem %s162_s25, 2048  ;;  %p926_p2 = scmp.lt.s32.totalorder %s162_s25, %s162_s25 }
  0x23   : > { %p919_p7 = scmp.ne.s32.totalorder %s162_s25, %s918_s10  ;;  %p927_p6 = scmp.lt.s32.totalorder %s918_s10, %s918_s10 }
  0x25   : > { %p921_p9 = pnand %p919_p7, %p907_p12  ;;  %p928_p4 = por %p927_p6, %p926_p2 }
  0x27   : > { %p922_p1 = pneg %p921_p9 }
  0x29   : > { %p929_p8 = pnand %p928_p4, %p922_p1 }
  0x2b   : > { %932 = shalt.err (!%p929_p8)
}
  0x2c   : > { %s1103_s11 = smov 128   ;;  %s1104_s12 = smov 8  }
  0x2d   : > { %841 = dma.hbm_to_vmem [thread:$0]  (!%p1186_p10), %s1435_s2, 2048, %s162_s25, [#allocation6], %s1103_s11, %s1103_s11, %s1104_s12  }
  0x2e   : > { %s933_s27 = scalar_lea.hbm %s1424_s3, 4096 }
  0x2f   : > { %p934_p11 = scmp.ne.s32.totalorder %s1424_s3, %s933_s27  ;;  %p940_p4 = scmp.lt.u32.totalorder %s933_s27, %s1424_s3 }
  0x31   : > { %p936_p1 = pnand %p934_p11, %p907_p12 }
  0x33   : > { %p937_p2 = pneg %p936_p1 }
  0x35   : > { %p942_p6 = pnand %p940_p4, %p937_p2 }
  0x37   : > { %945 = shalt.err (!%p942_p6)
}
  0x38   : > { %s946_s25 = scalar_lea.vmem %s1190_s28, 4096  ;;  %p954_p3 = scmp.lt.s32.totalorder %s1190_s28, %s1190_s28 }
  0x39   : > { %p947_p8 = scmp.ne.s32.totalorder %s1190_s28, %s946_s25  ;;  %p955_p5 = scmp.lt.s32.totalorder %s946_s25, %s946_s25 }
  0x3b   : > { %p949_p13 = pnand %p947_p8, %p907_p12  ;;  %p956_p7 = por %p955_p5, %p954_p3 }
  0x3d   : > { %p950_p0 = pneg %p949_p13 }
  0x3f   : > { %p957_p9 = pnand %p956_p7, %p950_p0 }
  0x41   : > { %960 = shalt.err (!%p957_p9)
}
  0x42   : > { %s1105_s7 = smov 256   ;;  %s1106_s8 = smov 16  }
  0x43   : > { %844 = dma.hbm_to_vmem [thread:$0]  (!%p1186_p10), %s1424_s3, 4096, %s1190_s28, [#allocation9], %s1105_s7, %s1105_s7, %s1106_s8  }
  0x44   : > { %s1240_s11 = sadd.s32 1, %s1099_s18   ;;  %s31_s13 = sadd.s32 1, %s1095_s17 }
  0x45   : > { %s28_s12 = ssub.s32 %s1099_s18, %s1240_s11  ;;  %p38_p11 = scmp.ne.s32.totalorder %s1095_s17, %s1091_s16 }
  0x46   : > { %p29_p12 = scmp.eq.s32.totalorder %s28_s12, 0  ;;  %p39_p1 = scmp.eq.s32.totalorder %s1099_s18, 0 }
  0x47   : > { %p1436_p4 = scmp.eq.s32.totalorder %s1159_s19, 3  ;;  %p858_p8 = scmp.lt.s32.totalorder %s1099_s18, 4 }
  0x48   : > { %s1249_s14 = scalar_select %p29_p12, %s1095_s17, %s31_s13  }
  0x49   : > { %p40_p2 = por %p39_p1, %p38_p11  ;;  %p1253_p6 = por %p1436_p4, %p38_p11 }
  0x4a   : > { %s188_s26 = sand.u32 1, %s1095_s17   ;;  %s695_s24 = sshll.u32 %s1099_s18, 7 }
  0x4b   : > { %s1437_s20 = scalar_select %p1253_p6, 1, 0 }
  0x4c   : > { %s1259_s28 = sshll.u32 %s188_s26, 3  ;;  %s1265_s30 = scalar_lea.hbm %s1421_s0, %s695_s24 }
  0x4d   : > { %s192_s5 = scalar_lea.vmem [#allocation2], %s1259_s28  ;;  %p1270_p10 = pnand %p858_p8, %p40_p2 }
  0x4e   : > { %s199_s6 = sshll.u32 %s192_s5, 4  ;;  %s1277_s9 = scalar_lea.hbm %s1422_s1, %s695_s24  ;;  %s1268_s6 = int_to_ptr.vmem [resolvable:$true] %s199_s6 }
  0x4f   : > { %s206_s10 = sand.u32 1, %s1099_s18   ;;  %s189_s12 = scalar_lea.sflag [#allocation3], %s188_s26 }
  0x50   : > { %s961_s13 = scalar_lea.hbm %s1265_s30, 128  ;;  %p963_p0 = pneg %p1270_p10 }
  0x51   : > { %p962_p13 = scmp.ne.s32.totalorder %s1265_s30, %s961_s13  ;;  %s966_s5 = scalar_lea.hbm %s1421_s0, 512 }
  0x52   : > { %p967_p7 = scmp.lt.u32.totalorder %s1265_s30, %s1421_s0  ;;  %p968_p9 = scmp.lt.u32.totalorder %s966_s5, %s961_s13 }
  0x53   : > { %p964_p3 = pnand %p963_p0, %p962_p13  ;;  %p970_p11 = scmp.lt.u32.totalorder %s961_s13, %s1265_s30 }
  0x54   : > { %p969_p12 = por %p968_p9, %p967_p7 }
  0x55   : > { %p965_p5 = pneg %p964_p3 }
  0x56   : > { %p971_p1 = por %p970_p11, %p969_p12 }
  0x58   : > { %p972_p2 = pnand %p971_p1, %p965_p5 }
  0x5a   : > { %975 = shalt.err (!%p972_p2)
}
  0x5b   : > { %s976_s26 = scalar_lea.vmem %s1268_s6, 128  ;;  %s1107_s24 = smov [#allocation2]  }
  0x5c   : > { %p977_p4 = scmp.ne.s32.totalorder %s1268_s6, %s976_s26  ;;  %s981_s8 = sshll.u32 %s1107_s24, 4  ;;  %s982_s8 = int_to_ptr.vmem [resolvable:$false] %s981_s8 }
  0x5d   : > { %s983_s2 = scalar_lea.vmem %s982_s8, 256  ;;  %p984_p3 = scmp.lt.s32.totalorder %s1268_s6, %s982_s8 }
  0x5e   : > { %p979_p8 = pnand %p977_p4, %p963_p0  ;;  %p985_p7 = scmp.lt.s32.totalorder %s983_s2, %s976_s26 }
  0x60   : > { %p980_p13 = pneg %p979_p8  ;;  %p986_p9 = por %p985_p7, %p984_p3 }
  0x62   : > { %p987_p12 = pnand %p986_p9, %p980_p13 }
  0x64   : > { %990 = shalt.err (!%p987_p12)
}
  0x65   : > { %848 = dma.hbm_to_vmem [thread:$0]  (!%p1270_p10), %s1265_s30, 128, %s1268_s6, %s189_s12  }
  0x66   : > { %s210_s13 = scalar_lea.vmem [#allocation5], %s1259_s28  ;;  %s207_s29 = scalar_lea.sflag [#allocation6], %s206_s10 }
  0x67   : > { %s217_s27 = sshll.u32 %s210_s13, 4  ;;  %s991_s5 = scalar_lea.hbm %s1277_s9, 128  ;;  %s218_s27 = int_to_ptr.vmem [resolvable:$true] %s217_s27 }
  0x68   : > { %p992_p5 = scmp.ne.s32.totalorder %s1277_s9, %s991_s5  ;;  %s996_s24 = scalar_lea.hbm %s1422_s1, 512 }
  0x69   : > { %p997_p2 = scmp.lt.u32.totalorder %s1277_s9, %s1422_s1  ;;  %p998_p4 = scmp.lt.u32.totalorder %s996_s24, %s991_s5 }
  0x6a   : > { %p994_p11 = pnand %p992_p5, %p963_p0  ;;  %p1000_p13 = scmp.lt.u32.totalorder %s991_s5, %s1277_s9 }
  0x6b   : > { %p999_p8 = por %p998_p4, %p997_p2 }
  0x6c   : > { %p995_p1 = pneg %p994_p11 }
  0x6d   : > { %p1001_p3 = por %p1000_p13, %p999_p8 }
  0x6f   : > { %p1002_p7 = pnand %p1001_p3, %p995_p1 }
  0x71   : > { %1005 = shalt.err (!%p1002_p7)
}
  0x72   : > { %s1006_s28 = scalar_lea.vmem %s218_s27, 128  ;;  %s1108_s30 = smov [#allocation5]  }
  0x73   : > { %p1007_p9 = scmp.ne.s32.totalorder %s218_s27, %s1006_s28  ;;  %s1011_s6 = sshll.u32 %s1108_s30, 4  ;;  %s1012_s6 = int_to_ptr.vmem [resolvable:$false] %s1011_s6 }
  0x74   : > { %s1013_s10 = scalar_lea.vmem %s1012_s6, 256  ;;  %p1014_p11 = scmp.lt.s32.totalorder %s218_s27, %s1012_s6 }
  0x75   : > { %p1009_p12 = pnand %p1007_p9, %p963_p0  ;;  %p1015_p6 = scmp.lt.s32.totalorder %s1013_s10, %s1006_s28 }
  0x77   : > { %p1010_p5 = pneg %p1009_p12  ;;  %p1016_p2 = por %p1015_p6, %p1014_p11 }
  0x79   : > { %p1017_p4 = pnand %p1016_p2, %p1010_p5 }
  0x7b   : > { %1020 = shalt.err (!%p1017_p4)
}
  0x7c   : > { %851 = dma.hbm_to_vmem [thread:$0]  (!%p1270_p10), %s1277_s9, 128, %s218_s27, %s207_s29  }
  0x7d   : > { %p1439_p1 = scmp.ne.s32.totalorder %s1433_s23, 0 }
  0x7e   : > { %s1330_s12 = sand.u32 (!%p1439_p1), 1, %s1091_s16   ;;  %p1440_p6 = scmp.ne.s32.totalorder (!%p1439_p1), %s1431_s21, 0 }
  0x7f   : > { %226 = sbr.rel (%p1439_p1) target bundleno = 1007 (0x3ef), region = 36  ;;  %s1333_s13 = sshll.u32 (!%p1439_p1), %s1330_s12, 3 }
  0x80   : > { %s229_s5 = scalar_lea.sflag (!%p1439_p1), [#allocation3], %s1330_s12  ;;  %s232_s7 = scalar_lea.vmem (!%p1439_p1), [#allocation2], %s1333_s13 }
  0x86   : > { %1066 = dma.done.wait (%p1440_p6), %s229_s5, 128  }
  0x87   : > { %1068 = vsyncadd (%p1440_p6), %s229_s5, 4294967168  ;;  %s237_s23 = sand.u32 1, %s1159_s19   ;;  %s241_s9 = scalar_lea.vmem [#allocation5], %s1333_s13 }
  0x88   : > { %s238_s25 = scalar_lea.sflag [#allocation6], %s237_s23 }
  0x89   : > { %1070 = dma.done.wait (%p1440_p6), %s238_s25, 128  }
  0x8a   : > { %1072 = vsyncadd (%p1440_p6), %s238_s25, 4294967168  ;;  %p1441_p10 = scmp.eq.s32.totalorder %s1159_s19, 0 }
  0x8c   : > { %1074 = dma.done.wait (%p1441_p10), [#allocation6], 2048   ;;  %p1442_p0 = pmov %p1441_p10 }
  0x8e   : > { %1076 = vsyncadd (%p1442_p0), [#allocation6], 4294965248  ;;  %p1443_p8 = pmov %p1442_p0 }
  0x8f   : > { %p1444_p13 = pmov %p1442_p0 }
  0x90   : > { %1078 = dma.done.wait (%p1443_p8), [#allocation9], 4096  }
  0x91   : > { %1080 = vsyncadd (%p1444_p13), [#allocation9], 4294963200  ;;  %v1109_v0 = vmov 0.0|0.0   ;;  %vm1110_vm0 = vmmov 0   ;;  %v1111_v1 = vmov 0.0   ;;  %v280_v2 = vld [vmem:[#allocation7] sm:$0xff] }
  0x92   : > { %768 = vmatprep.subr.bf16.mxu0 %v1109_v0  ;;  %760 = vmatprep.mubr.msk.f32.mxu0 %vm1110_vm0, %v1111_v1  ;;  %v281_v3 = vld [vmem:[#allocation7 + $0x8] sm:$0xff]  ;;  %v282_v4 = vld [vmem:[#allocation7 + $0x10] sm:$0xff]  ;;  %v283_v6 = vld [vmem:[#allocation7 + $0x18] sm:$0xff]  ;;  %vm471_vm1 = vcmask 64512   ;;  %s706_s21 = sshll.u32 %s1159_s19, 7  ;;  %s278_s27 = scalar_lea.vmem [#allocation10], %s1333_s13 }
  0x93   : > { %463 = vmatprep.mubr.f32.mxu1 %v1111_v1  ;;  %v769_v5 = vpack.c.bf16 %v281_v3, %v280_v2  ;;  %v772_v7 = vpack.c.bf16 %v283_v6, %v282_v4  ;;  %v284_v8 = vld [vmem:[#allocation7 + $0x20] sm:$0xff]  ;;  %v285_v9 = vld [vmem:[#allocation7 + $0x28] sm:$0xff]  ;;  %v286_v11 = vld [vmem:[#allocation7 + $0x30] sm:$0xff]  ;;  %s577_s29 = sshll.u32 %s278_s27, 4  ;;  %s1378_s8 = scalar_lea.hbm %s1425_s4, %s706_s21  ;;  %s1380_s29 = int_to_ptr.vmem [resolvable:$true] %s577_s29 }
  0x94   : > { %v368_v10 = vld [vmem:[#allocation8 + $0x8] sm:$0xff]  ;;  %v287_v12 = vld [vmem:[#allocation7 + $0x38] sm:$0xff]  ;;  %v367_v14 = vld [vmem:[#allocation8] sm:$0xff]  ;;  %v775_v16 = vpack.c.bf16 %v285_v9, %v284_v8  ;;  %s564_s2 = scalar_lea.sflag [#allocation4], %s1330_s12  ;;  %s1021_s28 = scalar_lea.vmem %s1380_s29, 128 }
  0x95   : > { %770 = vmatpush3.bf16.msra.mxu0 %v769_v5  ;;  %v370_v13 = vld [vmem:[#allocation8 + $0x18] sm:$0xff]  ;;  %v369_v15 = vld [vmem:[#allocation8 + $0x10] sm:$0xff]  ;;  %v372_v19 = vld [vmem:[#allocation8 + $0x28] sm:$0xff]  ;;  %v778_v27 = vpack.c.bf16 %v287_v12, %v286_v11  ;;  %p1022_p3 = scmp.ne.s32.totalorder %s1380_s29, %s1021_s28  ;;  %p1445_p7 = scmp.ne.s32.totalorder %s1437_s20, 0 }
  0x96   : > { %771 = vmatprep.subr.bf16.mxu0 %v1109_v0  ;;  %v792_v17 = vpack.c.bf16 %v370_v13, %v368_v10  ;;  %v794_v18 = vpack.c.bf16 %v369_v15, %v367_v14  ;;  %v374_v20 = vld [vmem:[#allocation8 + $0x38] sm:$0xff]  ;;  %v371_v21 = vld [vmem:[#allocation8 + $0x20] sm:$0xff]  ;;  %v373_v23 = vld [vmem:[#allocation8 + $0x30] sm:$0xff]  ;;  %s1112_s19 = smov [#allocation10]  }
  0x97   : > { %v796_v22 = vpack.c.bf16 %v374_v20, %v372_v19  ;;  %v376_v24 = vld [vmem:[#allocation8 + $0x48] sm:$0xff]  ;;  %v378_v25 = vld [vmem:[#allocation8 + $0x58] sm:$0xff]  ;;  %v798_v26 = vpack.c.bf16 %v373_v23, %v371_v21  ;;  %v288_v28 = vld [vmem:[#allocation7 + $0x40] sm:$0xff]  ;;  %p1023_p9 = pnand %p1022_p3, %p1445_p7  ;;  %s1025_s30 = sshll.u32 %s1112_s19, 4  ;;  %s1026_s30 = int_to_ptr.vmem [resolvable:$false] %s1025_s30 }
  0x98   : > { %793 = vmatprep.subr.bf16.mxu1 %v792_v17  ;;  %v800_v29 = vpack.c.bf16 %v378_v25, %v376_v24  ;;  %v375_v30 = vld [vmem:[#allocation8 + $0x40] sm:$0xff]  ;;  %v377_v31 = vld [vmem:[#allocation8 + $0x50] sm:$0xff]  ;;  %v289_v32 = vld [vmem:[#allocation7 + $0x48] sm:$0xff]  ;;  %s1027_s6 = scalar_lea.vmem %s1026_s30, 256  ;;  %p1028_p5 = scmp.lt.s32.totalorder %s1380_s29, %s1026_s30 }
  0x99   : > { %773 = vmatpush3.bf16.msra.mxu0 %v772_v7  ;;  %795 = vmatpush1.bf16.msra.mxu1 %v794_v18  ;;  %v380_v33 = vld [vmem:[#allocation8 + $0x68] sm:$0xff]  ;;  %v382_v34 = vld [vmem:[#allocation8 + $0x78] sm:$0xff]  ;;  %v802_v35 = vpack.c.bf16 %v377_v31, %v375_v30  ;;  %v781_v36 = vpack.c.bf16 %v289_v32, %v288_v28  ;;  %v290_v37 = vld [vmem:[#allocation7 + $0x50] sm:$0xff]  ;;  %p1024_p12 = pneg %p1023_p9  ;;  %p1029_p11 = scmp.lt.s32.totalorder %s1027_s6, %s1021_s28 }
  0x9a   : > { %774 = vmatprep.subr.bf16.mxu0 %v1109_v0  ;;  %797 = vmatprep.subr.bf16.mxu1 %v796_v22  ;;  %v804_v38 = vpack.c.bf16 %v382_v34, %v380_v33  ;;  %v379_v39 = vld [vmem:[#allocation8 + $0x60] sm:$0xff]  ;;  %v381_v40 = vld [vmem:[#allocation8 + $0x70] sm:$0xff]  ;;  %v291_v41 = vld [vmem:[#allocation7 + $0x58] sm:$0xff] }
  0x9b   : > { %v384_v42 = vld [vmem:[#allocation8 + $0x88] sm:$0xff]  ;;  %v386_v43 = vld [vmem:[#allocation8 + $0x98] sm:$0xff]  ;;  %v806_v44 = vpack.c.bf16 %v381_v40, %v379_v39  ;;  %v784_v45 = vpack.c.bf16 %v291_v41, %v290_v37  ;;  %v292_v46 = vld [vmem:[#allocation7 + $0x60] sm:$0xff]  ;;  %p1030_p2 = por %p1029_p11, %p1028_p5 }
  0x9c   : > { %v808_v47 = vpack.c.bf16 %v386_v43, %v384_v42  ;;  %v383_v48 = vld [vmem:[#allocation8 + $0x80] sm:$0xff]  ;;  %v385_v49 = vld [vmem:[#allocation8 + $0x90] sm:$0xff]  ;;  %v293_v50 = vld [vmem:[#allocation7 + $0x68] sm:$0xff] }
  0x9d   : > { %776 = vmatpush3.bf16.msra.mxu0 %v775_v16  ;;  %799 = vmatpush1.bf16.msra.mxu1 %v798_v26  ;;  %v388_v51 = vld [vmem:[#allocation8 + $0xa8] sm:$0xff]  ;;  %v390_v52 = vld [vmem:[#allocation8 + $0xb8] sm:$0xff]  ;;  %v810_v53 = vpack.c.bf16 %v385_v49, %v383_v48  ;;  %v787_v54 = vpack.c.bf16 %v293_v50, %v292_v46  ;;  %v294_v55 = vld [vmem:[#allocation7 + $0x70] sm:$0xff]  ;;  %p1031_p4 = pnand %p1030_p2, %p1024_p12 }
  0x9e   : > { %777 = vmatprep.subr.bf16.mxu0 %v1109_v0  ;;  %801 = vmatprep.subr.bf16.mxu1 %v800_v29  ;;  %v812_v56 = vpack.c.bf16 %v390_v52, %v388_v51  ;;  %v387_v57 = vld [vmem:[#allocation8 + $0xa0] sm:$0xff]  ;;  %v389_v58 = vld [vmem:[#allocation8 + $0xb0] sm:$0xff]  ;;  %v295_v59 = vld [vmem:[#allocation7 + $0x78] sm:$0xff] }
  0x9f   : > { %v392_v60 = vld [vmem:[#allocation8 + $0xc8] sm:$0xff]  ;;  %v394_v61 = vld [vmem:[#allocation8 + $0xd8] sm:$0xff]  ;;  %v814_v62 = vpack.c.bf16 %v389_v58, %v387_v57  ;;  %v790_v63 = vpack.c.bf16 %v295_v59, %v294_v55  ;;  %v391_v3 = vld [vmem:[#allocation8 + $0xc0] sm:$0xff] }
  0xa0   : > { %v816_v2 = vpack.c.bf16 %v394_v61, %v392_v60  ;;  %v393_v4 = vld [vmem:[#allocation8 + $0xd0] sm:$0xff]  ;;  %v396_v5 = vld [vmem:[#allocation8 + $0xe8] sm:$0xff]  ;;  %v398_v6 = vld [vmem:[#allocation8 + $0xf8] sm:$0xff] }
  0xa1   : > { %779 = vmatpush3.bf16.msra.mxu0 %v778_v27  ;;  %803 = vmatpush1.bf16.msra.mxu1 %v802_v35  ;;  %v818_v7 = vpack.c.bf16 %v393_v4, %v391_v3  ;;  %v279_v8 = vld [vmem:[%s232_s7] sm:$0xff]  ;;  %v820_v9 = vpack.c.bf16 %v398_v6, %v396_v5  ;;  %v470_v16 = vld [vmem:[%s241_s9] sm:$0xff] }
  0xa2   : > { %780 = vmatprep.subr.bf16.mxu0 %v1109_v0  ;;  %805 = vmatprep.subr.bf16.mxu1 %v804_v38  ;;  %v395_v10 = vld [vmem:[#allocation8 + $0xe0] sm:$0xff] }
  0xa5   : > { %782 = vmatpush3.bf16.msra.mxu0 %v781_v36  ;;  %807 = vmatpush1.bf16.msra.mxu1 %v806_v44 }
  0xa6   : > { %783 = vmatprep.subr.bf16.mxu0 %v1109_v0  ;;  %809 = vmatprep.subr.bf16.mxu1 %v808_v47 }
  0xa9   : > { %785 = vmatpush3.bf16.msra.mxu0 %v784_v45  ;;  %811 = vmatpush1.bf16.msra.mxu1 %v810_v53 }
  0xaa   : > { %786 = vmatprep.subr.bf16.mxu0 %v1109_v0  ;;  %813 = vmatprep.subr.bf16.mxu1 %v812_v56 }
  0xad   : > { %788 = vmatpush3.bf16.msra.mxu0 %v787_v54  ;;  %815 = vmatpush1.bf16.msra.mxu1 %v814_v62 }
  0xae   : > { %789 = vmatprep.subr.bf16.mxu0 %v1109_v0  ;;  %817 = vmatprep.subr.bf16.mxu1 %v816_v2  ;;  %v397_v0 = vld [vmem:[#allocation8 + $0xf0] sm:$0xff] }
  0xaf   : > { %v822_v11 = vpack.c.bf16 %v397_v0, %v395_v10 }
  0xb1   : > { %791 = vmatpush3.bf16.msra.mxu0 %v790_v63  ;;  %819 = vmatpush1.bf16.msra.mxu1 %v818_v7 }
  0xb2   : > { %763 = vmatprep.subr.mxu0 %v1111_v1  ;;  %821 = vmatprep.subr.bf16.mxu1 %v820_v9 }
  0xb4   : > { %761 = vmatmul.mubr.f32.vlgmr.msra.gmra.mrb[0].mxu0 %v279_v8 }
  0xb5   : > { %765 = vmatprep.mubr.msk.f32.mxu0 %vm1110_vm0, %v1111_v1  ;;  %823 = vmatpush1.bf16.msra.mxu1 %v822_v11 }
 0x187   : > { %v362_v12 = vpop.f32.mrb[0].mxu0 }
 0x188   : > { %v366_v13 = vmax.f32 %v362_v12, 0.0  ;;  %v762_v14 = vpop.f32.mrb[1].mxu0 }
 0x18a   : > { %464 = vmatmul.mubr.f32.vlgmr.msra.gmra.mrb[0].mxu1 %v366_v13 }
 0x25d   : > { %v465_v15 = vpop.f32.mrb[0].mxu1 }
 0x25e   : > { %v467_v17 = vpop.f32.mrb[1].mxu1 }
 0x25f   : > { %764 = vmatpush3.msra.mxu0 %v467_v17 }
 0x260   : > { %766 = vmatmul.mubr.msk.f32.vlgmr.msra.gmra.mrb[2].mxu0 %vm471_vm1, %v470_v16 }
 0x333   : > { %v541_v18 = vpop.f32.mrb[2].mxu0 }
 0x334   : > { %v545_v19 = vadd.f32 %v541_v18, %v465_v15  ;;  %v767_v20 = vpop.f32.mrb[3].mxu0 }
 0x336   : > { %546 = vadd.xlane.f32.xlu0 %v545_v19  ;;  %v549_v1 = vmul.f32 %v545_v19, %v545_v19 }
 0x33a   : > { %550 = vadd.xlane.f32.xlu0 %v549_v1 }
 0x3c3   : > { %v547_v21 = vpop.xlane.xlu0 %546 }
 0x3c4   : > { %v548_v22 = vmul.f32 0.0625, %v547_v21 }
 0x3c6   : > { %v553_v24 = vmul.f32 %v548_v22, %v548_v22  ;;  %v556_v29 = vsub.f32 %v545_v19, %v548_v22 }
 0x3c7   : > { %v551_v23 = vpop.xlane.xlu0 %550 }
 0x3c8   : > { %v552_v25 = vmul.f32 0.0625, %v551_v23 }
 0x3ca   : > { %v554_v26 = vsub.f32 %v552_v25, %v553_v24 }
 0x3cc   : > { %v555_v27 = vmax.f32 %v554_v26, 0.0 }
 0x3ce   : > { %v557_v28 = vadd.f32 1e-05, %v555_v27 }
 0x3d0   : > { %903 = vrsqrt.f32 %v557_v28 }
 0x3da   : > { %v904_v30 = vpop.eup %903 }
 0x3db   : > { %v559_v31 = vmul.f32 %v904_v30, %v556_v29 }
 0x3dd   : > { %v560_v32 = vmax.f32 %v559_v31, 0.0 }
 0x3df   : > { %v561_v33 = vadd.f32 %v560_v32, %v279_v8 }
 0x3e1   : > { %562 = vst [vmem:[%s278_s27] sm:$0xff] %v561_v33 }
 0x3e2   : > { %1034 = shalt.err (!%p1031_p4)
}
 0x3e3   : > { %s1035_s10 = scalar_lea.hbm %s1378_s8, 128  ;;  %s1039_s5 = scalar_lea.hbm %s1425_s4, 512 }
 0x3e4   : > { %p1036_p1 = scmp.ne.s32.totalorder %s1378_s8, %s1035_s10  ;;  %p1040_p0 = scmp.lt.u32.totalorder %s1378_s8, %s1425_s4 }
 0x3e5   : > { %p1041_p8 = scmp.lt.u32.totalorder %s1039_s5, %s1035_s10  ;;  %p1043_p3 = scmp.lt.u32.totalorder %s1035_s10, %s1378_s8 }
 0x3e6   : > { %p1037_p6 = pnand %p1036_p1, %p1445_p7 }
 0x3e7   : > { %p1042_p13 = por %p1041_p8, %p1040_p0 }
 0x3e8   : > { %p1038_p10 = pneg %p1037_p6 }
 0x3e9   : > { %p1044_p9 = por %p1043_p3, %p1042_p13 }
 0x3eb   : > { %p1045_p12 = pnand %p1044_p9, %p1038_p10 }
 0x3ed   : > { %1048 = shalt.err (!%p1045_p12)
}
 0x3ee   : > { %836 = dma.vmem_to_hbm [thread:$0]  (%p1445_p7), %s1380_s29, 128, %s1378_s8, %s564_s2  }
 0x3ef PF: > { %p861_p5 = scmp.ge.s32.totalorder %s1099_s18, 2  ;;  %s589_s25 = sand.u32 1, %s1087_s15  }
 0x3f0   : > { %p1446_p11 = scmp.ne.s32.totalorder %s1432_s22, 0  ;;  %s590_s9 = scalar_lea.sflag [#allocation4], %s589_s25 }
 0x3f2   : > { %p853_p2 = pnand %p861_p5, %p1446_p11 }
 0x3f4   : > { %1082 = dma.done.wait (!%p853_p2), %s590_s9, 128  }
 0x3f5   : > { %1084 = vsyncadd (!%p853_p2), %s590_s9, 4294967168  ;;  %p21_p4 = scmp.ge.s32.totalorder %s1240_s11, 6   ;;  %s1447_s15 = smov %s1091_s16 }
 0x3f6   : > { %s1448_s16 = smov %s1095_s17  ;;  %s1449_s17 = smov %s1249_s14 }
 0x3f7   : > { %s1450_s18 = smov %s1240_s11  ;;  %23 = sbr.rel (!%p21_p4) target bundleno = 10 (0xa), region = 102 }
 0x3fe   :  { %595 = vsyncpa [#allocation3], 1 }
 0x3ff   :  { %597 = vsyncpa [#allocation3 + $0x1], 1 }
 0x400   :  { %598 = vsyncpa [#allocation6], 1 }
 0x401   :  { %600 = vsyncpa [#allocation6 + $0x1], 1 }
 0x402   :  { %601 = vsyncpa [#allocation9], 1 }
 0x403   :  { %602 = vsyncpa [#allocation4], 1 }
 0x404   :  { %604 = vsyncpa [#allocation4 + $0x1], 1 }

</bundles_post_ra>
